<compile_context>
chip_gen: v6e
topology: v6e:2x2x1
jax: 0.10.0
libtpu: 0.0.40
codegen_flags: <defaults>
</compile_context>

<pallas_src>
import functools
from typing import NamedTuple, Optional

import numpy as np
import jax
import jax.numpy as jnp
from jax.experimental import pallas as pl
from jax.experimental.pallas import tpu as pltpu


# ---------------------------------------------------------------------------
# Weight preparation (done once, at weight-load time)
# ---------------------------------------------------------------------------

class FFNWeights(NamedTuple):
    w13: jax.Array   # [n_h, dim, 2*tile_h]  interleaved [w1_tile | w3_tile] slabs
    w2: jax.Array    # [hidden, dim]
    dim: int
    hidden: int
    tile_h: int


def _default_tile_h(hidden: int) -> int:
    # 256 is a good universal choice (fits v7x's 64 MiB VMEM comfortably and
    # does not change total weight bytes streamed on bigger-VMEM chips).
    for cand in (256, 512, 128):
        if hidden % cand == 0:
            return cand
    return hidden


def prepare_ffn_weights(w1, w3, w2, *, tile_h: Optional[int] = None) -> FFNWeights:
    """Build the pre-tiled, interleaved w1|w3 slab once at weight-load time."""
    dim, hidden = w1.shape
    assert w1.shape == (dim, hidden)
    assert w3.shape == (dim, hidden)
    assert w2.shape == (hidden, dim)
    if tile_h is None:
        tile_h = _default_tile_h(hidden)
    tile_h = min(tile_h, hidden)
    assert hidden % tile_h == 0, "hidden must be divisible by tile_h"
    assert tile_h % 128 == 0 or tile_h == hidden, "tile_h must be lane-aligned"
    n_h = hidden // tile_h
    # [dim, n_h, 2*tile_h] -> [n_h, dim, 2*tile_h]: each k-tile is one
    # contiguous DMA slab [w1_k | w3_k].
    w13 = jnp.concatenate(
        [w1.reshape(dim, n_h, tile_h), w3.reshape(dim, n_h, tile_h)], axis=-1)
    w13 = jnp.transpose(w13, (1, 0, 2))
    return FFNWeights(w13=w13, w2=w2, dim=dim, hidden=hidden, tile_h=tile_h)


# ---------------------------------------------------------------------------
# Kernels
# ---------------------------------------------------------------------------

def _gated_silu(h1, h3, approx_sigmoid):
    # silu(h1) * h3 = h1 * sigmoid(h1) * h3 ; sigmoid = 1 / (1 + exp(-h1)).
    if approx_sigmoid:
        sig = pl.reciprocal(1.0 + jnp.exp(-h1), approx=True)   # EUP slot
    else:
        sig = jax.nn.sigmoid(h1)
    return (h1 * sig) * h3


def _ffn_kernel_scratch(x_ref, w13_ref, w2_ref, o_ref, acc_ref, *, approx_sigmoid):
    """f32 scratch accumulator variant (output dtype != f32)."""
    k = pl.program_id(1)
    th = w2_ref.shape[0]

    @pl.when(k == 0)
    def _():
        acc_ref[...] = jnp.zeros_like(acc_ref)

    x = x_ref[...]                                                     # [tn, dim]
    w13 = w13_ref[0]                                                   # [dim, 2*th]
    h = jnp.dot(x, w13, preferred_element_type=jnp.float32)            # [tn, 2*th]
    g = _gated_silu(h[:, :th], h[:, th:], approx_sigmoid)
    acc_ref[...] += jnp.dot(g.astype(w2_ref.dtype), w2_ref[...],
                            preferred_element_type=jnp.float32)        # [tn, dim]

    @pl.when(k == pl.num_programs(1) - 1)
    def _():
        o_ref[...] = acc_ref[...].astype(o_ref.dtype)


def _ffn_kernel_inplace(x_ref, w13_ref, w2_ref, o_ref, *, approx_sigmoid):
    """Accumulate directly into the resident f32 output block (no scratch)."""
    k = pl.program_id(1)
    th = w2_ref.shape[0]

    @pl.when(k == 0)
    def _():
        o_ref[...] = jnp.zeros_like(o_ref)

    x = x_ref[...]
    w13 = w13_ref[0]
    h = jnp.dot(x, w13, preferred_element_type=jnp.float32)
    g = _gated_silu(h[:, :th], h[:, th:], approx_sigmoid)
    o_ref[...] += jnp.dot(g.astype(w2_ref.dtype), w2_ref[...],
                          preferred_element_type=jnp.float32)


# ---------------------------------------------------------------------------
# Per-generation tiling / VMEM heuristics
# ---------------------------------------------------------------------------

def _vmem_capacity_bytes() -> int:
    try:
        return int(pltpu.get_tpu_info().vmem_capacity_bytes)
    except Exception:
        return 64 << 20   # conservative if the query is unavailable


def _default_vmem_limit_bytes() -> int:
    # Leave ~16 MiB headroom for Mosaic internal scratch / semaphores.
    # v5e/v6e (128 MiB) -> ~112 MiB, v7x (64 MiB per TC) -> ~48 MiB.
    cap = _vmem_capacity_bytes()
    return max(32 << 20, cap - (16 << 20))


def _pick_tile_n(N, dim, tile_h, w_itemsize, x_itemsize, out_itemsize,
                 vmem_limit_bytes):
    """Largest power-of-two tile_n whose working set fits ~70% of the limit."""
    budget = int(0.7 * vmem_limit_bytes)
    # Double-buffered w13 + w2 tiles.
    weight_bytes = 2 * (dim * 2 * tile_h + tile_h * dim) * w_itemsize
    best = 8
    for tn in (8, 16, 32, 64, 128, 256, 512, 1024):
        if tn > N:
            break
        act_bytes = tn * dim * (2 * x_itemsize      # x double-buffer
                                + 2 * out_itemsize  # out double-buffer
                                + 4)                # f32 accumulator
        if weight_bytes + act_bytes <= budget:
            best = tn
    # Keep >= 2 N-tiles on long sequences so the "parallel" axis can shard
    # across the two TensorCores on v7x.
    if best >= N and N >= 512:
        best = max(8, ((N // 2) // 8) * 8)
    return best


# ---------------------------------------------------------------------------
# Wrapper
# ---------------------------------------------------------------------------

def _xla_ffn(x2, weights: FFNWeights):
    """Exact XLA reference / decode fallback using the pre-tiled weights."""
    xf = x2.astype(jnp.float32)
    w13 = weights.w13.astype(jnp.float32)                 # [n_h, dim, 2*tile_h]
    h = jnp.einsum("nd,hdt->nht", xf, w13)                # [N, n_h, 2*tile_h]
    th, N = weights.tile_h, x2.shape[0]
    h1 = h[..., :th].reshape(N, weights.hidden)
    h3 = h[..., th:].reshape(N, weights.hidden)
    g = jax.nn.silu(h1) * h3
    return g @ weights.w2.astype(jnp.float32)


def feed_forward(x, weights: FFNWeights, *,
                 tile_n: Optional[int] = None,
                 approx_sigmoid: bool = True,
                 vmem_limit_bytes: Optional[int] = None,
                 min_pallas_tokens: int = 128,
                 resident_buffering: Optional[int] = None,
                 weight_buffering: Optional[int] = None):
    """SwiGLU FFN: x [B, S, dim]; weights from prepare_ffn_weights()."""
    batch, seq, dim = x.shape
    assert dim == weights.dim
    hidden, tile_h = weights.hidden, weights.tile_h
    n_h = hidden // tile_h
    # Guard against a prep-time / call-time tile_h mismatch (silent wrong results).
    assert weights.w13.shape == (n_h, dim, 2 * tile_h), \
        "w13 layout does not match the tile_h it was prepared with"
    assert weights.w2.shape == (hidden, dim)

    N = batch * seq
    x2 = x.reshape(N, dim)
    out_dtype = x.dtype

    if N < min_pallas_tokens:
        # Decode-sized input: pure weight streaming — let XLA handle it.
        return _xla_ffn(x2, weights).astype(out_dtype).reshape(batch, seq, dim)

    if vmem_limit_bytes is None:
        vmem_limit_bytes = _default_vmem_limit_bytes()

    w_isz = jnp.dtype(weights.w13.dtype).itemsize
    x_isz = jnp.dtype(x.dtype).itemsize
    o_isz = jnp.dtype(out_dtype).itemsize
    if tile_n is None:
        tile_n = _pick_tile_n(N, dim, tile_h, w_isz, x_isz, o_isz, vmem_limit_bytes)
    tile_n = min(tile_n, N)
    if N >= 8:
        tile_n = max(8, tile_n)

    # Pad the token axis to a multiple of tile_n (remainder-tile availability).
    n_tiles = (N + tile_n - 1) // tile_n
    N_pad = n_tiles * tile_n
    assert tile_n % 8 == 0 or tile_n == N_pad
    if N_pad != N:
        x2 = jnp.pad(x2, ((0, N_pad - N), (0, 0)))

    def _spec(shape, index_map, buffering):
        if buffering is None:
            return pl.BlockSpec(shape, index_map)
        return pl.BlockSpec(shape, index_map, pipeline_mode=pl.Buffered(buffering))

    in_specs = [
        _spec((tile_n, dim), lambda n, k: (n, 0), resident_buffering),        # x (k-invariant)
        _spec((1, dim, 2 * tile_h), lambda n, k: (k, 0, 0), weight_buffering),  # fused w1|w3 slab
        _spec((tile_h, dim), lambda n, k: (k, 0), weight_buffering),          # w2 tile
    ]
    out_spec = _spec((tile_n, dim), lambda n, k: (n, 0), resident_buffering)  # resident over k

    if out_dtype == jnp.float32:
        kernel = functools.partial(_ffn_kernel_inplace, approx_sigmoid=approx_sigmoid)
        scratch = []
    else:
        kernel = functools.partial(_ffn_kernel_scratch, approx_sigmoid=approx_sigmoid)
        scratch = [pltpu.VMEM((tile_n, dim), jnp.float32)]

    cost = pl.CostEstimate(
        flops=6 * N_pad * dim * hidden,
        transcendentals=N_pad * hidden,
        bytes_accessed=(n_tiles * (dim * 2 * hidden + hidden * dim) * w_isz
                        + N_pad * dim * (x_isz + o_isz)),
    )

    out2 = pl.pallas_call(
        kernel,
        out_shape=jax.ShapeDtypeStruct((N_pad, dim), out_dtype),
        grid_spec=pltpu.PrefetchScalarGridSpec(
            num_scalar_prefetch=0,
            grid=(N_pad // tile_n, n_h),
            in_specs=in_specs,
            out_specs=out_spec,
            scratch_shapes=scratch,
        ),
        compiler_params=pltpu.CompilerParams(
            dimension_semantics=("parallel", "arbitrary"),
            vmem_limit_bytes=int(vmem_limit_bytes),
        ),
        cost_estimate=cost,
    )(x2, weights.w13, weights.w2)
    return out2[:N].reshape(batch, seq, dim)


# ---------------------------------------------------------------------------
# Test harness
# ---------------------------------------------------------------------------

def _llama_hidden_dim(hidden_dim, multiple_of, ffn_dim_multiplier):
    hidden_dim = int(2 * hidden_dim / 3)
    if ffn_dim_multiplier is not None:
        hidden_dim = int(ffn_dim_multiplier * hidden_dim)
    return multiple_of * ((hidden_dim + multiple_of - 1) // multiple_of)


def _ref_ffn(x, w1, w3, w2):
    xf = x.astype(jnp.float32).reshape(-1, x.shape[-1])
    h1 = xf @ w1.astype(jnp.float32)
    h3 = xf @ w3.astype(jnp.float32)
    out = (jax.nn.silu(h1) * h3) @ w2.astype(jnp.float32)
    return out.reshape(*x.shape[:-1], w2.shape[1])


if __name__ == "__main__":
    # Small, TPU-tile-friendly config consistent with the module's FFN sizing:
    # FeedForward(dim, hidden_dim=4*dim, multiple_of, ffn_dim_multiplier).
    dim = 128
    hidden = _llama_hidden_dim(4 * dim, multiple_of=128, ffn_dim_multiplier=1.5)  # 512
    batch, seq = 2, 8

    key = jax.random.PRNGKey(0)
    kx, k1, k2, k3 = jax.random.split(key, 4)
    x_f32 = jax.random.normal(kx, (batch, seq, dim), dtype=jnp.float32)
    w1_f32 = jax.random.normal(k1, (dim, hidden), dtype=jnp.float32) * 0.02
    w3_f32 = jax.random.normal(k3, (dim, hidden), dtype=jnp.float32) * 0.02
    w2_f32 = jax.random.normal(k2, (hidden, dim), dtype=jnp.float32) * 0.02

    # --- bf16 path (bf16 MXU, f32 accumulation, approx-reciprocal sigmoid).
    #     Weights prepared ONCE (tile_h=128 -> 4 reduction tiles at toy shapes).
    x_bf = x_f32.astype(jnp.bfloat16)
    w_bf = prepare_ffn_weights(w1_f32.astype(jnp.bfloat16),
                               w3_f32.astype(jnp.bfloat16),
                               w2_f32.astype(jnp.bfloat16), tile_h=128)
    out_bf = feed_forward(x_bf, w_bf, tile_n=8, approx_sigmoid=True,
                          min_pallas_tokens=1)
    out_bf = jax.block_until_ready(out_bf)
    ref_bf = _ref_ffn(x_bf, w_bf_w1 := w1_f32.astype(jnp.bfloat16),
                      w3_f32.astype(jnp.bfloat16), w2_f32.astype(jnp.bfloat16))
    np.testing.assert_allclose(np.asarray(out_bf, dtype=np.float32),
                               np.asarray(ref_bf), rtol=5e-2, atol=5e-3)

    # --- f32 path, auto tiling (exercises default tile_h=256 prep, auto tile_n,
    #     auto VMEM limit, and the accumulate-into-output kernel variant).
    w_f32 = prepare_ffn_weights(w1_f32, w3_f32, w2_f32)   # default tile_h
    out_f32 = feed_forward(x_f32, w_f32, approx_sigmoid=False,
                           min_pallas_tokens=1)
    out_f32 = jax.block_until_ready(out_f32)
    ref_f32 = _ref_ffn(x_f32, w1_f32, w3_f32, w2_f32)
    np.testing.assert_allclose(np.asarray(out_f32), np.asarray(ref_f32),
                               rtol=2e-2, atol=1e-3)

    # --- padding path: batch*seq not divisible by tile_n.
    x_odd = jax.random.normal(jax.random.PRNGKey(1), (1, 12, dim), dtype=jnp.float32)
    out_odd = feed_forward(x_odd, w_f32, tile_n=8, approx_sigmoid=False,
                           min_pallas_tokens=1)
    out_odd = jax.block_until_ready(out_odd)
    ref_odd = _ref_ffn(x_odd, w1_f32, w3_f32, w2_f32)
    np.testing.assert_allclose(np.asarray(out_odd), np.asarray(ref_odd),
                               rtol=2e-2, atol=1e-3)

    # --- decode-sized input: falls back to XLA (no tiny-tile Pallas launch).
    x_dec = jax.random.normal(jax.random.PRNGKey(2), (1, 1, dim), dtype=jnp.float32)
    out_dec = jax.block_until_ready(feed_forward(x_dec, w_f32))
    ref_dec = _ref_ffn(x_dec, w1_f32, w3_f32, w2_f32)
    np.testing.assert_allclose(np.asarray(out_dec), np.asarray(ref_dec),
                               rtol=2e-2, atol=1e-3)

    print("KERNEL_OK")
</pallas_src>

<mosaic_0001>
module attributes {stable_mosaic.version = 11 : i64} {
  func.func @_ffn_kernel_scratch(%arg0: i32, %arg1: i32, %arg2: memref<8x128xbf16, #tpu.memory_space<vmem>>, %arg3: memref<1x128x256xbf16, #tpu.memory_space<vmem>>, %arg4: memref<128x128xbf16, #tpu.memory_space<vmem>>, %arg5: memref<8x128xbf16, #tpu.memory_space<vmem>>, %arg6: memref<8x128xf32, #tpu.memory_space<vmem>>) attributes {dimension_semantics = [#tpu.dimension_semantics<parallel>, #tpu.dimension_semantics<arbitrary>], iteration_bounds = array<i64: 2, 4>, scalar_prefetch = 0 : i64, scratch_operands = 1 : i64, tpu.core_type = #tpu.core_type<tc>, window_params = [{transform_indices = @transform_0, window_bounds = array<i64: 8, 128>}, {transform_indices = @transform_1, window_bounds = array<i64: 1, 128, 256>}, {transform_indices = @transform_2, window_bounds = array<i64: 128, 128>}, {transform_indices = @transform_3, window_bounds = array<i64: 8, 128>}]} {
    %c0_i32 = arith.constant 0 : i32
    %0 = arith.cmpi eq, %arg1, %c0_i32 : i32
    %1 = arith.extui %0 : i1 to i32
    %c0_i32_0 = arith.constant 0 : i32
    %2 = arith.cmpi ne, %1, %c0_i32_0 : i32
    scf.if %2 {
      %cst_15 = arith.constant 0.000000e+00 : f32
      %26 = vector.broadcast %cst_15 : f32 to vector<8x128xf32>
      %c0_16 = arith.constant 0 : index
      %c0_17 = arith.constant 0 : index
      %27 = vector.load %arg6[%c0_16, %c0_17] : memref<8x128xf32, #tpu.memory_space<vmem>>, vector<8x128xf32>
      tpu.vector_store %arg6[%c0_16, %c0_17], %26 {strides = array<i32>} : memref<8x128xf32, #tpu.memory_space<vmem>>, vector<8x128xf32>,
    } else {
    }
    %c0 = arith.constant 0 : index
    %c0_1 = arith.constant 0 : index
    %3 = vector.load %arg2[%c0, %c0_1] : memref<8x128xbf16, #tpu.memory_space<vmem>>, vector<8x128xbf16>
    %c0_2 = arith.constant 0 : index
    %c0_3 = arith.constant 0 : index
    %c0_4 = arith.constant 0 : index
    %4 = vector.load %arg3[%c0_2, %c0_3, %c0_4] : memref<1x128x256xbf16, #tpu.memory_space<vmem>>, vector<1x128x256xbf16>
    %5 = vector.shape_cast %4 : vector<1x128x256xbf16> to vector<128x256xbf16>
    %cst = arith.constant dense<0.000000e+00> : vector<8x256xf32>
    %6 = tpu.matmul %3, %5, %cst {dimension_numbers = #tpu.dot_dimension_numbers<[1], [0], [0], [1], [0, 0, 1, 1], [], []>} : vector<8x128xbf16>, vector<128x256xbf16>, vector<8x256xf32> -> vector<8x256xf32>
    %7 = vector.extract_strided_slice %6 {offsets = [0, 0], sizes = [8, 128], strides = [1, 1]} : vector<8x256xf32> to vector<8x128xf32>
    %8 = vector.extract_strided_slice %6 {offsets = [0, 128], sizes = [8, 128], strides = [1, 1]} : vector<8x256xf32> to vector<8x128xf32>
    %cst_5 = arith.constant 0.000000e+00 : f32
    %9 = vector.broadcast %cst_5 : f32 to vector<8x128xf32>
    %10 = arith.subf %9, %7 : vector<8x128xf32>
    %11 = math.exp %10 : vector<8x128xf32>
    %cst_6 = arith.constant 1.000000e+00 : f32
    %12 = vector.broadcast %cst_6 : f32 to vector<8x128xf32>
    %13 = arith.addf %12, %11 : vector<8x128xf32>
    %14 = tpu.reciprocal %13 {approx = true} : vector<8x128xf32> -> vector<8x128xf32>
    %15 = arith.mulf %7, %14 : vector<8x128xf32>
    %16 = arith.mulf %15, %8 : vector<8x128xf32>
    %c0_7 = arith.constant 0 : index
    %c0_8 = arith.constant 0 : index
    %17 = vector.load %arg6[%c0_7, %c0_8] : memref<8x128xf32, #tpu.memory_space<vmem>>, vector<8x128xf32>
    %18 = arith.truncf %16 : vector<8x128xf32> to vector<8x128xbf16>
    %c0_9 = arith.constant 0 : index
    %c0_10 = arith.constant 0 : index
    %19 = vector.load %arg4[%c0_9, %c0_10] : memref<128x128xbf16, #tpu.memory_space<vmem>>, vector<128x128xbf16>
    %cst_11 = arith.constant dense<0.000000e+00> : vector<8x128xf32>
    %20 = tpu.matmul %18, %19, %cst_11 {dimension_numbers = #tpu.dot_dimension_numbers<[1], [0], [0], [1], [0, 0, 1, 1], [], []>} : vector<8x128xbf16>, vector<128x128xbf16>, vector<8x128xf32> -> vector<8x128xf32>
    %21 = arith.addf %17, %20 : vector<8x128xf32>
    %c0_12 = arith.constant 0 : index
    %c0_13 = arith.constant 0 : index
    %22 = vector.load %arg6[%c0_12, %c0_13] : memref<8x128xf32, #tpu.memory_space<vmem>>, vector<8x128xf32>
    tpu.vector_store %arg6[%c0_12, %c0_13], %21 {strides = array<i32>} : memref<8x128xf32, #tpu.memory_space<vmem>>, vector<8x128xf32>,
    %c3_i32 = arith.constant 3 : i32
    %23 = arith.cmpi eq, %arg1, %c3_i32 : i32
    %24 = arith.extui %23 : i1 to i32
    %c0_i32_14 = arith.constant 0 : i32
    %25 = arith.cmpi ne, %24, %c0_i32_14 : i32
    scf.if %25 {
      %c0_15 = arith.constant 0 : index
      %c0_16 = arith.constant 0 : index
      %26 = vector.load %arg6[%c0_15, %c0_16] : memref<8x128xf32, #tpu.memory_space<vmem>>, vector<8x128xf32>
      %27 = arith.truncf %26 : vector<8x128xf32> to vector<8x128xbf16>
      %c0_17 = arith.constant 0 : index
      %c0_18 = arith.constant 0 : index
      %28 = vector.load %arg5[%c0_17, %c0_18] : memref<8x128xbf16, #tpu.memory_space<vmem>>, vector<8x128xbf16>
      tpu.vector_store %arg5[%c0_17, %c0_18], %27 {strides = array<i32>} : memref<8x128xbf16, #tpu.memory_space<vmem>>, vector<8x128xbf16>,
    } else {
    }
    return
  }
  func.func @transform_0(%arg0: i32, %arg1: i32) -> (i32, i32) {
    %c0_i32 = arith.constant 0 : i32
    %c0_i32_0 = arith.constant 0 : i32
    return %arg0, %c0_i32 : i32, i32
  }
  func.func @transform_1(%arg0: i32, %arg1: i32) -> (i32, i32, i32) {
    %c0_i32 = arith.constant 0 : i32
    %c0_i32_0 = arith.constant 0 : i32
    %c0_i32_1 = arith.constant 0 : i32
    return %arg1, %c0_i32, %c0_i32_0 : i32, i32, i32
  }
  func.func @transform_2(%arg0: i32, %arg1: i32) -> (i32, i32) {
    %c0_i32 = arith.constant 0 : i32
    %c0_i32_0 = arith.constant 0 : i32
    return %arg1, %c0_i32 : i32, i32
  }
  func.func @transform_3(%arg0: i32, %arg1: i32) -> (i32, i32) {
    %c0_i32 = arith.constant 0 : i32
    %c0_i32_0 = arith.constant 0 : i32
    return %arg0, %c0_i32 : i32, i32
  }
}

</mosaic_0001>

<bundles_post_ra>
// kernel: tpu_custom_call.1
= control target key start
LH: loop header
LB: loop body
LE: loop exit
PB: predicated region body
PF: predicated region fallthrough
CT: control target
= control target key end

     0   :  { %s1457_s0 = inlined_call_operand.hbm [shape: bf16[16,128], index: 0, kind: input, shape index: {}]   ;;  %s1458_s1 = inlined_call_operand.hbm [shape: bf16[4,128,256], index: 1, kind: input, shape index: {}]   ;;  %s1459_s2 = inlined_call_operand.hbm [shape: bf16[512,128], index: 2, kind: input, shape index: {}]   ;;  %s1460_s3 = inlined_call_operand.hbm [shape: bf16[16,128], index: 3, kind: output, shape index: {}]  }
   0x1   :  { %1469 = sst [smem:[#allocation20_spill]] %s1458_s1 }
   0x2   :  { %1470 = sst [smem:[#allocation21_spill]] %s1460_s3 }
   0x3   :  { %8 = vsyncpa [#allocation4], 0 }
   0x4   :  { %10 = vsyncpa [#allocation4 + $0x1], 0 }
   0x5   :  { %11 = vsyncpa [#allocation7], 0 }
   0x6   :  { %13 = vsyncpa [#allocation7 + $0x1], 0 }
   0x7   :  { %14 = vsyncpa [#allocation5], 0 }
   0x8   :  { %16 = vsyncpa [#allocation5 + $0x1], 0  ;;  %s1156_s12 = smov 0   ;;  %s1158_s13 = smov 0  }
   0x9   :  { %s1160_s14 = smov 0   ;;  %s1162_s15 = smov 0  }
   0xa   :  { %s1164_s16 = smov 0   ;;  %s1166_s17 = smov 0  }
   0xb   :  { %s1168_s18 = smov 0   ;;  %s1170_s19 = smov 0  }
   0xc   :  { %s1172_s20 = smov 0   ;;  %s1174_s21 = smov 0  }
   0xd   :  { %s1176_s22 = smov 0  }
   0xe LB: > { %1471 = sst [smem:[#allocation13_spill]] %s1102_s17  ;;  %s31_s23 = sadd.s32 1, %s1114_s20  ;;  %s1122_s22 = sphi %s1176_s22, %s22_s22   ;;  %s1118_s21 = sphi %s1174_s21, %s1498_s21   ;;  %s1114_s20 = sphi %s1172_s20, %s1505_s20   ;;  %s1110_s19 = sphi %s1170_s19, %s1496_s19   ;;  %s1106_s18 = sphi %s1168_s18, %s1504_s18   ;;  %s1102_s17 = sphi %s1166_s17, %s1495_s17   ;;  %s1098_s16 = sphi %s1164_s16, %s1503_s16   ;;  %s1094_s15 = sphi %s1162_s15, %s1502_s15   ;;  %s1090_s14 = sphi %s1160_s14, %s1501_s14   ;;  %s1086_s13 = sphi %s1158_s13, %s1500_s13   ;;  %s1082_s12 = sphi %s1156_s12, %s1499_s12  }
   0xf   : > { %1472 = sst [smem:[#allocation14_spill]] %s1110_s19  ;;  %p49_p0 = scmp.eq.s32.totalorder %s1122_s22, 0 }
  0x10   : > { %1473 = sst [smem:[#allocation15_spill]] %s1118_s21  ;;  %s67_s24 = sadd.s32 1, %s1090_s14 }
  0x11   : > { %p74_p1 = scmp.ne.s32.totalorder %s1090_s14, %s1086_s13  ;;  %p80_p2 = scmp.ne.s32.totalorder %s1086_s13, %s1082_s12 }
  0x12   : > { %p1463_p4 = scmp.lt.s32.totalorder %s1122_s22, 8  ;;  %s174_s25 = sand.u32 1, %s1122_s22  }
  0x13   : > { %p76_p3 = por %p74_p1, %p49_p0  ;;  %s176_s26 = sand.u32 1, %s1090_s14  }
  0x14   : > { %s686_s27 = sshll.u32 %s176_s26, 7  ;;  %s727_s28 = sshll.u32 %s1114_s20, 11 }
  0x15   : > { %s1474_s1 = sld [smem:[#allocation20_spill]]  ;;  %s178_s5 = scalar_lea.vmem [#allocation6], %s686_s27 }
  0x16   : > { %s185_s6 = sshll.u32 %s178_s5, 4  ;;  %p1229_p5 = pnand %p1463_p4, %p76_p3  ;;  %s186_s6 = int_to_ptr.vmem [resolvable:$true] %s185_s6 }
  0x17   : > { %s689_s8 = sshll.u32 %s176_s26, 6  ;;  %s1233_s9 = scalar_lea.sflag [#allocation7], %s174_s25 }
  0x18   : > { %p1461_p6 = pneg %p1229_p5  ;;  %s927_s10 = scalar_lea.vmem %s186_s6, 2048 }
  0x19   : > { %p928_p7 = scmp.ne.s32.totalorder %s186_s6, %s927_s10  ;;  %s1124_s11 = smov [#allocation6]  }
  0x1a   : > { %s932_s27 = sshll.u32 %s1124_s11, 4  ;;  %s933_s27 = int_to_ptr.vmem [resolvable:$false] %s932_s27 }
  0x1b   : > { %s184_s4 = scalar_lea.hbm %s1474_s1, %s727_s28  ;;  %p930_p8 = pnand %p928_p7, %p1461_p6 }
  0x1c   : > { %s934_s28 = scalar_lea.vmem %s933_s27, 4096  ;;  %p935_p10 = scmp.lt.s32.totalorder %s186_s6, %s933_s27 }
  0x1d   : > { %p931_p9 = pneg %p930_p8  ;;  %p936_p11 = scmp.lt.s32.totalorder %s934_s28, %s927_s10 }
  0x1f   : > { %p937_p12 = por %p936_p11, %p935_p10 }
  0x21   : > { %p938_p13 = pnand %p937_p12, %p931_p9 }
  0x23   : > { %941 = shalt.err (!%p938_p13)
}
  0x24   : > { %s1125_s26 = smov 128   ;;  %s1126_s25 = smov 8  }
  0x25   : > { %772 = dma.hbm_to_vmem [thread:$0]  (!%p1229_p5), %s184_s4, 2048, %s186_s6, %s1233_s9, %s1125_s26, %s1125_s26, %s1126_s25  }
  0x26   : > { %p692_p1 = scmp.ge.s32.totalorder %s1122_s22, 1  ;;  %s199_s29 = scalar_lea.vmem [#allocation8], %s689_s8 }
  0x27   : > { %s1244_s30 = sshll.u32 %s199_s29, 4  ;;  %p214_p3 = scmp.lt.s32.totalorder %s1122_s22, 9  ;;  %s207_s30 = int_to_ptr.vmem [resolvable:$true] %s1244_s30 }
  0x28   : > { %s1252_s10 = sadd.s32 4294967295, %s1122_s22   ;;  %s681_s4 = sadd.s32 4294967294, %s1122_s22  }
  0x29   : > { %p1247_p7 = pnand %p692_p1, %p214_p3  ;;  %p32_p8 = scmp.ge.s32.totalorder %s31_s23, 4 }
  0x2a   : > { %s34_s6 = sadd.s32 1, %s1118_s21  ;;  %s41_s8 = sadd.s32 1, %s1102_s17 }
  0x2b   : > { %s1507_s23 = smov (%p32_p8, %s31_s23), 0  ;;  %s1509_s6 = smov (!%p32_p8, %s34_s6), %s1118_s21 }
  0x2c   : > { %1477 = sst [smem:[#allocation16_spill]] %s1507_s23  ;;  %p48_p9 = scmp.ne.s32.totalorder %s1102_s17, %s1098_s16 }
  0x2d   : > { %p54_p10 = scmp.ne.s32.totalorder %s1098_s16, %s1094_s15  ;;  %p36_p11 = scmp.ge.s32.totalorder %s1509_s6, 2 }
  0x2e   : > { %p55_p12 = scmp.eq.s32.totalorder %s1252_s10, 0  ;;  %p1274_p13 = por %p49_p0, %p48_p9 }
  0x2f   : > { %s64_s27 = ssub.s32 %s1114_s20, %s1507_s23  ;;  %s1511_s6 = smov (%p36_p11, %s1509_s6), 0 }
  0x30   : > { %1479 = sst [smem:[#allocation17_spill]] %s1511_s6  ;;  %p1285_p1 = por %p55_p12, %p54_p10 }
  0x31   : > { %p65_p3 = scmp.eq.s32.totalorder %s64_s27, 0  ;;  %s38_s26 = ssub.s32 %s1118_s21, %s1511_s6 }
  0x32   : > { %p1294_p8 = por %p80_p2, %p55_p12  ;;  %p39_p0 = scmp.eq.s32.totalorder %s38_s26, 0 }
  0x33   : > { %p130_p6 = scmp.eq.s32.totalorder %s1252_s10, 7  ;;  %p136_p4 = scmp.eq.s32.totalorder %s681_s4, 7 }
  0x34   : > { %s1302_s29 = scalar_select %p65_p3, %s1090_s14, %s67_s24  }
  0x35   : > { %s1305_s1 = scalar_select %p39_p0, %s1102_s17, %s41_s8  }
  0x36   : > { %1482 = sst [smem:[#allocation18_spill]] %s1302_s29  ;;  %p1310_p11 = por %p130_p6, %p48_p9 }
  0x37   : > { %1483 = sst [smem:[#allocation19_spill]] %s1305_s1  ;;  %s156_s27 = sand.u32 1, %s1102_s17  }
  0x38   : > { %s1484_s23 = scalar_select %p1310_p11, 1, 0 }
  0x39   : > { %s685_s12 = sshll.u32 %s1118_s21, 6  ;;  %p1319_p2 = por %p136_p4, %p54_p10 }
  0x3a   : > { %s684_s26 = sshll.u32 %s156_s27, 2  ;;  %s165_s24 = scalar_lea.hbm %s1457_s0, %s685_s12 }
  0x3b   : > { %s1485_s6 = scalar_select %p1319_p2, 1, 0 }
  0x3c   : > { %p1486_p12 = scmp.lt.s32.totalorder %s1122_s22, 8  ;;  %s160_s4 = scalar_lea.vmem [#allocation3], %s684_s26 }
  0x3d   : > { %s167_s1 = sshll.u32 %s160_s4, 4  ;;  %s728_s21 = sshll.u32 %s1114_s20, 10  ;;  %s168_s1 = int_to_ptr.vmem [resolvable:$true] %s167_s1 }
  0x3e   : > { %p1330_p3 = pnand %p1486_p12, %p1274_p13  ;;  %s157_s17 = scalar_lea.sflag [#allocation4], %s156_s27 }
  0x3f   : > { %s955_s29 = scalar_lea.vmem %s168_s1, 64  ;;  %s1127_s3 = smov [#allocation3]  }
  0x40   : > { %p944_p4 = pneg %p1330_p3  ;;  %p956_p6 = scmp.ne.s32.totalorder %s168_s1, %s955_s29 }
  0x41   : > { %s960_s19 = sshll.u32 %s1127_s3, 4  ;;  %s961_s19 = int_to_ptr.vmem [resolvable:$false] %s960_s19 }
  0x42   : > { %p958_p9 = pnand %p956_p6, %p944_p4  ;;  %s962_s11 = scalar_lea.vmem %s961_s19, 128 }
  0x43   : > { %p963_p13 = scmp.lt.s32.totalorder %s168_s1, %s961_s19  ;;  %p964_p0 = scmp.lt.s32.totalorder %s962_s11, %s955_s29 }
  0x44   : > { %p959_p10 = pneg %p958_p9 }
  0x45   : > { %p965_p12 = por %p964_p0, %p963_p13 }
  0x47   : > { %p966_p2 = pnand %p965_p12, %p959_p10 }
  0x49   : > { %969 = shalt.err (!%p966_p2)
}
  0x4a   : > { %769 = dma.hbm_to_vmem [thread:$0]  (!%p1330_p3), %s165_s24, 64, %s168_s1, %s157_s17  }
  0x4b   : > { %s205_s26 = scalar_lea.hbm %s1459_s2, %s728_s21  ;;  %s983_s4 = scalar_lea.vmem %s207_s30, 1024 }
  0x4c   : > { %p984_p4 = scmp.ne.s32.totalorder %s207_s30, %s983_s4  ;;  %p1488_p6 = pneg %p1229_p5 }
  0x4d   : > { %s1128_s29 = smov [#allocation8]  }
  0x4e   : > { %p986_p9 = pnand %p984_p4, %p1488_p6  ;;  %s988_s3 = sshll.u32 %s1128_s29, 4  ;;  %s989_s3 = int_to_ptr.vmem [resolvable:$false] %s988_s3 }
  0x4f   : > { %s990_s19 = scalar_lea.vmem %s989_s3, 2048  ;;  %p991_p2 = scmp.lt.s32.totalorder %s207_s30, %s989_s3 }
  0x50   : > { %p987_p11 = pneg %p986_p9  ;;  %p992_p10 = scmp.lt.s32.totalorder %s990_s19, %s983_s4 }
  0x52   : > { %p993_p13 = por %p992_p10, %p991_p2 }
  0x54   : > { %p994_p0 = pnand %p993_p13, %p987_p11 }
  0x56   : > { %997 = shalt.err (!%p994_p0)
}
  0x57   : > { %s1129_s1 = smov 64   ;;  %s1130_s17 = smov 4  }
  0x58   : > { %775 = dma.hbm_to_vmem [thread:$0]  (!%p1229_p5), %s205_s26, 1024, %s207_s30, %s1233_s9, %s1129_s1, %s1129_s1, %s1130_s17  }
  0x59   : > { %218 = sbr.rel (%p1247_p7) target bundleno = 607 (0x25f), region = 32  ;;  %s1352_s21 = sand.u32 (!%p1247_p7), 1, %s1098_s16  }
  0x5a   : > { %s693_s24 = sshll.u32 (!%p1247_p7), %s1352_s21, 2  ;;  %s221_s8 = scalar_lea.sflag (!%p1247_p7), [#allocation4], %s1352_s21 }
  0x5b   : > { %s1356_s11 = scalar_lea.vmem (!%p1247_p7), [#allocation3], %s693_s24 }
  0x5e   : > { %1069 = dma.done.wait (%p1285_p1), %s221_s8, 64  }
  0x5f   : > { %1071 = vsyncadd (%p1285_p1), %s221_s8, 4294967232  ;;  %s229_s7 = sand.u32 1, %s1252_s10   ;;  %s231_s9 = sand.u32 1, %s1086_s13  }
  0x60   : > { %s694_s30 = sshll.u32 %s231_s9, 7  ;;  %s230_s5 = scalar_lea.sflag [#allocation7], %s229_s7 }
  0x61   : > { %s1364_s27 = scalar_lea.vmem [#allocation6], %s694_s30 }
  0x62   : > { %1073 = dma.done.wait (%p1294_p8), %s230_s5, 3072  }
  0x63   : > { %1075 = vsyncadd (%p1294_p8), %s230_s5, 4294964224  ;;  %s695_s12 = sshll.u32 %s231_s9, 6  ;;  %s1372_s4 = scalar_lea.vmem [#allocation9], %s693_s24 }
  0x64   : > { %s1370_s26 = scalar_lea.vmem [#allocation8], %s695_s12  ;;  %p697_p5 = scmp.ne.s32.totalorder %s1106_s18, 0 }
  0x66   : > { %280 = sbr.rel (%p697_p5) target bundleno = 109 (0x6d), region = 48 }
  0x6b   : > { %v1131_v0 = vmov 0.0  }
  0x6c   : > { %281 = vst [vmem:[#allocation2] sm:$0xff] %v1131_v0 }
  0x6d PF: > { %v878_v1 = vld [vmem:[%s1364_s27 + $0x74] ss:$8 sps:$4 sm:$0xff]   ;;  %v880_v2 = vld [vmem:[%s1364_s27 + $0x70] ss:$8 sps:$4 sm:$0xff]   ;;  %v1132_v3 = vmov 0   ;;  %v1133_v20 = vmov 0.0  }
  0x6e   : > { %411 = vmatprep.mubr.bf16.mxu0 %v1132_v3  ;;  %379 = vmatprep.subr.bf16.mxu0 %v878_v1  ;;  %v881_v4 = vld [vmem:[%s1364_s27 + $0x64] ss:$8 sps:$4 sm:$0xff]   ;;  %v883_v5 = vld [vmem:[%s1364_s27 + $0x60] ss:$8 sps:$4 sm:$0xff]   ;;  %v884_v6 = vld [vmem:[%s1364_s27 + $0x54] ss:$8 sps:$4 sm:$0xff]  }
  0x6f   : > { %380 = vmatpush1.bf16.msra.mxu0 %v880_v2  ;;  %v886_v7 = vld [vmem:[%s1364_s27 + $0x50] ss:$8 sps:$4 sm:$0xff]   ;;  %v887_v8 = vld [vmem:[%s1364_s27 + $0x44] ss:$8 sps:$4 sm:$0xff]   ;;  %v889_v9 = vld [vmem:[%s1364_s27 + $0x40] ss:$8 sps:$4 sm:$0xff]   ;;  %738 = vmatprep.subr.bf16.mxu1 %v1133_v20 }
  0x70   : > { %381 = vmatprep.subr.bf16.mxu0 %v881_v4  ;;  %v890_v10 = vld [vmem:[%s1364_s27 + $0x34] ss:$8 sps:$4 sm:$0xff]   ;;  %v892_v11 = vld [vmem:[%s1364_s27 + $0x30] ss:$8 sps:$4 sm:$0xff]   ;;  %v893_v12 = vld [vmem:[%s1364_s27 + $0x24] ss:$8 sps:$4 sm:$0xff]  }
  0x71   : > { %v895_v13 = vld [vmem:[%s1364_s27 + $0x20] ss:$8 sps:$4 sm:$0xff]   ;;  %v896_v14 = vld [vmem:[%s1364_s27 + $0x14] ss:$8 sps:$4 sm:$0xff]   ;;  %v898_v15 = vld [vmem:[%s1364_s27 + $0x10] ss:$8 sps:$4 sm:$0xff]  }
  0x72   : > { %v899_v16 = vld [vmem:[%s1364_s27 + $0x4] ss:$8 sps:$4 sm:$0xff]   ;;  %v901_v17 = vld [vmem:[%s1364_s27] ss:$8 sps:$4 sm:$0xff]   ;;  %v282_v18 = vld [vmem:[%s1356_s11] sm:$0xf] }
  0x73   : > { %382 = vmatpush1.bf16.msra.mxu0 %v883_v5  ;;  %v902_v19 = vld [vmem:[%s1370_s26 + $0x38] sm:$0xff]   ;;  %v903_v21 = vld [vmem:[%s1370_s26 + $0x30] sm:$0xff]   ;;  %v904_v22 = vld [vmem:[%s1370_s26 + $0x28] sm:$0xff]   ;;  %vm1134_vm0 = vmmov 0   ;;  %p722_p7 = scmp.ne.s32.totalorder %s1106_s18, 3 }
  0x74   : > { %383 = vmatprep.subr.bf16.mxu0 %v884_v6  ;;  %739 = vmatpush3.bf16.msra.mxu1 %v902_v19  ;;  %v905_v23 = vld [vmem:[%s1370_s26 + $0x20] sm:$0xff]   ;;  %v906_v24 = vld [vmem:[%s1370_s26 + $0x18] sm:$0xff]   ;;  %v907_v25 = vld [vmem:[%s1370_s26 + $0x10] sm:$0xff]  }
  0x75   : > { %740 = vmatprep.subr.bf16.mxu1 %v1133_v20  ;;  %v908_v26 = vld [vmem:[%s1370_s26 + $0x8] sm:$0xff]   ;;  %v909_v27 = vld [vmem:[%s1370_s26] sm:$0xff]   ;;  %754 = vmatprep.mubr.msk.bf16.mxu1 %vm1134_vm0, %v1133_v20  ;;  %v427_v40 = vld [vmem:[#allocation2] sm:$0xff] }
  0x77   : > { %384 = vmatpush1.bf16.msra.mxu0 %v886_v7 }
  0x78   : > { %385 = vmatprep.subr.bf16.mxu0 %v887_v8  ;;  %741 = vmatpush3.bf16.msra.mxu1 %v903_v21 }
  0x79   : > { %742 = vmatprep.subr.bf16.mxu1 %v1133_v20 }
  0x7b   : > { %386 = vmatpush1.bf16.msra.mxu0 %v889_v9 }
  0x7c   : > { %387 = vmatprep.subr.bf16.mxu0 %v890_v10  ;;  %743 = vmatpush3.bf16.msra.mxu1 %v904_v22 }
  0x7d   : > { %744 = vmatprep.subr.bf16.mxu1 %v1133_v20 }
  0x7f   : > { %388 = vmatpush1.bf16.msra.mxu0 %v892_v11 }
  0x80   : > { %389 = vmatprep.subr.bf16.mxu0 %v893_v12  ;;  %745 = vmatpush3.bf16.msra.mxu1 %v905_v23 }
  0x81   : > { %746 = vmatprep.subr.bf16.mxu1 %v1133_v20 }
  0x83   : > { %390 = vmatpush1.bf16.msra.mxu0 %v895_v13 }
  0x84   : > { %391 = vmatprep.subr.bf16.mxu0 %v896_v14  ;;  %747 = vmatpush3.bf16.msra.mxu1 %v906_v24 }
  0x85   : > { %748 = vmatprep.subr.bf16.mxu1 %v1133_v20 }
  0x87   : > { %392 = vmatpush1.bf16.msra.mxu0 %v898_v15 }
  0x88   : > { %393 = vmatprep.subr.bf16.mxu0 %v899_v16  ;;  %749 = vmatpush3.bf16.msra.mxu1 %v907_v25 }
  0x89   : > { %750 = vmatprep.subr.bf16.mxu1 %v1133_v20 }
  0x8b   : > { %394 = vmatpush1.bf16.msra.mxu0 %v901_v17 }
  0x8c   : > { %751 = vmatpush3.bf16.msra.mxu1 %v908_v26 }
  0x8d   : > { %752 = vmatprep.subr.bf16.mxu1 %v1133_v20 }
  0x8e   : > { %412 = vmatmul.mubr.bf16.vlgmr.msra.gmra.mxu0 %v282_v18 }
  0x90   : > { %753 = vmatpush3.bf16.msra.mxu1 %v909_v27 }
 0x14e   : > { %v413_v28 = vpop.f32.mrf.mxu0 }
 0x14f   : > { %v420_v29 = vsub.f32 0.0, %v413_v28 }
 0x150   : > { %v415_v30 = vpop.f32.mrf.mxu0 }
 0x151   : > { %v421_v31 = vmul.f32 1.442695, %v420_v29 }
 0x152   : > { %v417_v32 = vpop.f32.mrf.mxu0 }
 0x153   : > { %910 = vpow2.f32 %v421_v31 }
 0x154   : > { %v418_v33 = vpop.f32.mrf.mxu0 }
 0x160   : > { %v911_v34 = vpop.eup %910 }
 0x161   : > { %v423_v35 = vadd.f32 1.0, %v911_v34 }
 0x163   : > { %912 = vrcp.f32 %v423_v35 }
 0x170   : > { %v913_v36 = vpop.eup %912 }
 0x171   : > { %v425_v37 = vmul.f32 %v913_v36, %v413_v28 }
 0x173   : > { %v426_v38 = vmul.f32 %v425_v37, %v415_v30 }
 0x175   : > { %v428_v39 = vpack.c.bf16 %v426_v38, %v426_v38 }
 0x177   : > { %755 = vmatmul.mubr.bf16.vlgmr.msra.gmra.mxu1 %v428_v39 }
 0x237   : > { %v527_v41 = vpop.f32.mrf.mxu1 }
 0x238   : > { %v533_v42 = vadd.f32 %v527_v41, %v427_v40 }
 0x239   : > { %v756_v43 = vpop.f32.mrf.mxu1  ;;  %538 = sbr.rel (%p722_p7) target bundleno = 581 (0x245), region = 52 }
 0x23a   : > { %534 = vst [vmem:[#allocation2] sm:$0xff] %v533_v42 }
 0x23b   : > { %v530_v44 = vpop.f32.mrf.mxu1 }
 0x23d   : > { %v757_v45 = vpop.f32.mrf.mxu1 }
 0x241   : > { %v539_v46 = vld [vmem:[#allocation2] sm:$0xff] }
 0x242   : > { %v540_v47 = vpack.c.bf16 %v539_v46, %v539_v46 }
 0x244   : > { %541 = vst [vmem:[%s1372_s4] sm:$0xf] %v540_v47 }
 0x245 PF: > { %s1489_s10 = sld [smem:[#allocation14_spill]]  ;;  %s556_s1 = sshll.u32 %s1372_s4, 4  ;;  %s557_s1 = int_to_ptr.vmem [resolvable:$true] %s556_s1 }
 0x246   : > { %s1490_s3 = sld [smem:[#allocation21_spill]]  ;;  %s543_s17 = scalar_lea.sflag [#allocation5], %s1352_s21 }
 0x247   : > { %s998_s24 = scalar_lea.vmem %s557_s1, 64  ;;  %p1491_p8 = scmp.ne.s32.totalorder %s1484_s23, 0 }
 0x248   : > { %p999_p1 = scmp.ne.s32.totalorder %s557_s1, %s998_s24  ;;  %s1135_s18 = smov [#allocation9]  }
 0x249   : > { %s1002_s8 = sshll.u32 %s1135_s18, 4  ;;  %s1003_s8 = int_to_ptr.vmem [resolvable:$false] %s1002_s8 }
 0x24a   : > { %p1000_p11 = pnand %p999_p1, %p1491_p8  ;;  %s1004_s11 = scalar_lea.vmem %s1003_s8, 128 }
 0x24b   : > { %s724_s28 = sshll.u32 %s1489_s10, 6  ;;  %p1005_p12 = scmp.lt.s32.totalorder %s557_s1, %s1003_s8 }
 0x24c   : > { %s554_s19 = scalar_lea.hbm %s1490_s3, %s724_s28  ;;  %p1001_p3 = pneg %p1000_p11 }
 0x24d   : > { %p1006_p4 = scmp.lt.s32.totalorder %s1004_s11, %s998_s24 }
 0x24f   : > { %p1007_p6 = por %p1006_p4, %p1005_p12 }
 0x251   : > { %p1008_p9 = pnand %p1007_p6, %p1001_p3 }
 0x253   : > { %1011 = shalt.err (!%p1008_p9)
}
 0x254   : > { %s1012_s7 = scalar_lea.hbm %s554_s19, 64  ;;  %s1016_s30 = scalar_lea.hbm %s1490_s3, 128 }
 0x255   : > { %p1013_p2 = scmp.ne.s32.totalorder %s554_s19, %s1012_s7  ;;  %p1017_p0 = scmp.lt.s32.totalorder %s554_s19, %s1490_s3 }
 0x256   : > { %p1018_p5 = scmp.lt.s32.totalorder %s1016_s30, %s1012_s7 }
 0x257   : > { %p1014_p10 = pnand %p1013_p2, %p1491_p8 }
 0x258   : > { %p1019_p7 = por %p1018_p5, %p1017_p0 }
 0x259   : > { %p1015_p13 = pneg %p1014_p10 }
 0x25b   : > { %p1020_p1 = pnand %p1019_p7, %p1015_p13 }
 0x25d   : > { %1023 = shalt.err (!%p1020_p1)
}
 0x25e   : > { %764 = dma.vmem_to_hbm [thread:$0]  (%p1491_p8), %s557_s1, 64, %s554_s19, %s543_s17  }
 0x25f PF: > { %p781_p11 = scmp.ge.s32.totalorder %s1122_s22, 2  ;;  %s568_s12 = sand.u32 1, %s1094_s15  }
 0x260   : > { %p1492_p3 = scmp.ne.s32.totalorder %s1485_s6, 0  ;;  %s569_s26 = scalar_lea.sflag [#allocation5], %s568_s12 }
 0x262   : > { %p777_p12 = pnand %p781_p11, %p1492_p3 }
 0x264   : > { %p778_p4 = pneg %p777_p12 }
 0x266   : > { %1077 = dma.done.wait (%p778_p4), %s569_s26, 64  }
 0x267   : > { %1079 = vsyncadd (%p778_p4), %s569_s26, 4294967232  ;;  %s22_s22 = sadd.s32 1, %s1122_s22   ;;  %s1493_s4 = sld [smem:[#allocation18_spill]] }
 0x268   : > { %p19_p6 = scmp.ge.s32.totalorder %s22_s22, 10   ;;  %s1494_s23 = sld [smem:[#allocation13_spill]] }
 0x269   : > { %s1495_s17 = sld [smem:[#allocation19_spill]]  ;;  %s1499_s12 = smov %s1086_s13 }
 0x26a   : > { %s1496_s19 = sld [smem:[#allocation15_spill]]  ;;  %s1500_s13 = smov %s1090_s14 }
 0x26b   : > { %s1497_s10 = sld [smem:[#allocation16_spill]]  ;;  %s1502_s15 = smov %s1098_s16 }
 0x26c   : > { %s1498_s21 = sld [smem:[#allocation17_spill]]  ;;  %s1504_s18 = smov %s1114_s20 }
 0x26d   : > { %s1501_s14 = smov %s1493_s4  ;;  %21 = sbr.rel (!%p19_p6) target bundleno = 14 (0xe), region = 109 }
 0x26e   : > { %s1503_s16 = smov %s1494_s23 }
 0x271   : > { %s1505_s20 = smov %s1497_s10 }
 0x272   :  { %574 = vsyncpa [#allocation4], 1 }
 0x273   :  { %576 = vsyncpa [#allocation4 + $0x1], 1 }
 0x274   :  { %577 = vsyncpa [#allocation7], 1 }
 0x275   :  { %579 = vsyncpa [#allocation7 + $0x1], 1 }
 0x276   :  { %580 = vsyncpa [#allocation5], 1 }
 0x277   :  { %582 = vsyncpa [#allocation5 + $0x1], 1 }

</bundles_post_ra>
